<compile_context>
chip_gen: v7x
topology: tpu7x:2x2x1
jax: 0.10.0
libtpu: 0.0.40
codegen_flags: <defaults>
</compile_context>

<pallas_src>
import math
import numpy as np
import jax
import jax.numpy as jnp
from jax import lax
from jax.experimental import pallas as pl
from jax.experimental.pallas import tpu as pltpu


# ------------------------- Config (synthetic, small) -------------------------
class Config:
    embedding_size = 16
    hidden_size = 32
    fc1_size = 8          # must equal seq_len for the bmm in attention()
    fc2_size = 16
    drop_prob = 0.1        # unused at inference (dropout == identity)


OUTPUT_SIZE = 4
BATCH = 2
SEQ = Config.fc1_size      # 8


# --------------------------------- Kernel ------------------------------------
def lstm_attention_kernel(x_ref,        # (S*Bp, E)  time-major rows, batch padded
                          w_ih_ref,     # (E, 4H)    pre-transposed
                          w_hh_ref,     # (H, 4H)    pre-transposed
                          b_ref,        # (1, 4H)    b_ih + b_hh
                          fc1h_ref,     # (H, S)     h-half of fc1, pre-transposed
                          fc1c_ref,     # (H, S)     c-half of fc1, pre-transposed
                          fc1_b_ref,    # (1, S)
                          fc2_w_ref,    # (H, F2)    pre-transposed
                          fc2_b_ref,    # (1, F2)
                          fc3_w_ref,    # (F2, O)    pre-transposed
                          fc3_b_ref,    # (1, O)
                          out_ref):     # (Bp, O)    log-probs
    B = out_ref.shape[0]
    S = fc1h_ref.shape[1]
    H = w_hh_ref.shape[0]

    w_hh_t = w_hh_ref[...]              # (H, 4H)

    # ---- single batched input projection, hoisted off the serial chain ----
    # One (S*B, E) @ (E, 4H) MXU call instead of S tiny ones; per-step slices
    # below are static and sublane-aligned (B is a multiple of 8).
    xg_all = (jnp.dot(x_ref[...], w_ih_ref[...],
                      preferred_element_type=jnp.float32)
              + b_ref[...])             # (S*B, 4H)

    # Lane mask selecting the g-gate (tanh) lanes of the (B, 4H) gate vreg.
    # PyTorch gate order: [i, f, g, o].
    lane = lax.broadcasted_iota(jnp.int32, (B, 4 * H), 1)
    g_lanes = (lane >= 2 * H) & (lane < 3 * H)

    # -------------------------- LSTM recurrence (hot path) -------------------
    # h / c carried as live vregs through a fully-unrolled loop; one EUP pass
    # per step for all four gates via sigmoid(x) = 0.5*(1 + tanh(x/2)).
    h = jnp.zeros((B, H), jnp.float32)
    c = jnp.zeros((B, H), jnp.float32)
    hs = []
    for t in range(S):
        gates = xg_all[t * B:(t + 1) * B, :] + jnp.dot(
            h, w_hh_t, preferred_element_type=jnp.float32)          # (B, 4H)
        pre = jnp.where(g_lanes, gates, 0.5 * gates)                 # VPU
        th = jnp.tanh(pre)                                           # 1 EUP pass
        acts = jnp.where(g_lanes, th, 0.5 * (th + 1.0))              # VPU
        i_g = acts[:, 0 * H:1 * H]
        f_g = acts[:, 1 * H:2 * H]
        g_g = acts[:, 2 * H:3 * H]
        o_g = acts[:, 3 * H:4 * H]
        c = f_g * c + i_g * g_g
        h = o_g * jnp.tanh(c)
        hs.append(h)                    # live vreg; no VMEM round trip

    # ------------------------------- attention --------------------------------
    # concat-free: fc1 was split into its h / c halves in the wrapper.
    attn_logits = (jnp.dot(h, fc1h_ref[...], preferred_element_type=jnp.float32)
                   + jnp.dot(c, fc1c_ref[...], preferred_element_type=jnp.float32)
                   + fc1_b_ref[...])                                 # (B, S)
    attn_logits = attn_logits - jnp.max(attn_logits, axis=1, keepdims=True)
    e = jnp.exp(attn_logits)
    attn = e / jnp.sum(e, axis=1, keepdims=True)                     # (B, S)

    # ctx[b, :] = sum_t attn[b, t] * h_t[b, :]   (== bmm in PyTorch)
    ctx = attn[:, 0:1] * hs[0]
    for t in range(1, S):
        ctx = ctx + attn[:, t:t + 1] * hs[t]                         # (B, H)

    # -------------------------------- MLP head --------------------------------
    a1 = jnp.maximum(ctx, 0.0)                                       # relu (+dropout=id)
    a2 = (jnp.dot(a1, fc2_w_ref[...], preferred_element_type=jnp.float32)
          + fc2_b_ref[...])
    a2 = jnp.maximum(a2, 0.0)                                        # relu (+dropout=id)
    a3 = (jnp.dot(a2, fc3_w_ref[...], preferred_element_type=jnp.float32)
          + fc3_b_ref[...])                                          # (B, O)

    # log-softmax over dim=1
    m = jnp.max(a3, axis=1, keepdims=True)
    lse = jnp.log(jnp.sum(jnp.exp(a3 - m), axis=1, keepdims=True)) + m
    out_ref[...] = a3 - lse


# -------------------------------- Wrapper -------------------------------------
def lstm_attention_forward(x, params):
    """x: (B, S, E) batch-first, float32. Returns (B, output_size) log-probs."""
    B, S, E = x.shape
    H = params["w_hh"].shape[1]
    O = params["fc3_w"].shape[0]

    # Pad batch to a sublane multiple (8): full sublane / MXU-row occupancy;
    # padded rows are discarded after the call.
    B_pad = max(8, ((B + 7) // 8) * 8)
    x_tm = jnp.transpose(x, (1, 0, 2))                 # time-major (S, B, E)
    if B_pad != B:
        x_tm = jnp.pad(x_tm, ((0, 0), (0, B_pad - B), (0, 0)))
    x_flat = x_tm.reshape(S * B_pad, E)                # row t*B_pad + b

    # Pre-transpose all weights in the wrapper (free XLA layout plumbing) and
    # split fc1 into h / c halves so the kernel avoids a lane concatenation.
    w_ih_t = params["w_ih"].T                          # (E, 4H)
    w_hh_t = params["w_hh"].T                          # (H, 4H)
    fc1h_t = params["fc1_w"][:, :H].T                  # (H, S)
    fc1c_t = params["fc1_w"][:, H:].T                  # (H, S)
    fc2_t = params["fc2_w"].T                          # (H, F2)
    fc3_t = params["fc3_w"].T                          # (F2, O)

    vmem = pl.BlockSpec(memory_space=pltpu.MemorySpace.VMEM)
    out = pl.pallas_call(
        lstm_attention_kernel,
        out_shape=jax.ShapeDtypeStruct((B_pad, O), jnp.float32),
        in_specs=[vmem] * 11,
        out_specs=vmem,
    )(x_flat,
      w_ih_t, w_hh_t, params["b"],
      fc1h_t, fc1c_t, params["fc1_b"],
      fc2_t, params["fc2_b"],
      fc3_t, params["fc3_b"])
    return out[:B]


# --------------------------- Pure-JAX reference --------------------------------
def reference_forward(x, params):
    B, S, E = x.shape
    H = params["w_hh"].shape[1]
    w_ih_t = params["w_ih"].T
    w_hh_t = params["w_hh"].T
    b = params["b"]

    def step(carry, x_t):
        h, c = carry
        g = x_t @ w_ih_t + h @ w_hh_t + b
        i = jax.nn.sigmoid(g[:, 0 * H:1 * H])
        f = jax.nn.sigmoid(g[:, 1 * H:2 * H])
        gg = jnp.tanh(g[:, 2 * H:3 * H])
        o = jax.nn.sigmoid(g[:, 3 * H:4 * H])
        c = f * c + i * gg
        h = o * jnp.tanh(c)
        return (h, c), h

    h0 = jnp.zeros((B, H), jnp.float32)
    (h, c), outs = lax.scan(step, (h0, h0), jnp.transpose(x, (1, 0, 2)))
    lstm_out = jnp.transpose(outs, (1, 0, 2))                 # (B, S, H)

    new_state = jnp.concatenate([h, c], axis=1)
    attn = jax.nn.softmax(new_state @ params["fc1_w"].T + params["fc1_b"], axis=1)
    ctx = jnp.einsum("bs,bsh->bh", attn, lstm_out)
    a = jax.nn.relu(ctx)
    a = jax.nn.relu(a @ params["fc2_w"].T + params["fc2_b"])
    a = a @ params["fc3_w"].T + params["fc3_b"]
    return jax.nn.log_softmax(a, axis=1)


# ---------------------------------- Main ---------------------------------------
def init_params(key):
    E, H = Config.embedding_size, Config.hidden_size
    S, F2, O = Config.fc1_size, Config.fc2_size, OUTPUT_SIZE
    ks = jax.random.split(key, 12)
    u = lambda k, shape, bound: jax.random.uniform(
        k, shape, jnp.float32, -bound, bound)
    kH = 1.0 / math.sqrt(H)
    return {
        "w_ih":  u(ks[0], (4 * H, E), kH),
        "w_hh":  u(ks[1], (4 * H, H), kH),
        # PyTorch has separate b_ih, b_hh; the sum is equivalent.
        "b":     (u(ks[2], (1, 4 * H), kH) + u(ks[3], (1, 4 * H), kH)),
        "fc1_w": u(ks[4], (S, 2 * H), 1.0 / math.sqrt(2 * H)),
        "fc1_b": u(ks[5], (1, S), 1.0 / math.sqrt(2 * H)),
        "fc2_w": u(ks[6], (F2, H), kH),
        "fc2_b": u(ks[7], (1, F2), kH),
        "fc3_w": u(ks[8], (O, F2), 1.0 / math.sqrt(F2)),
        "fc3_b": u(ks[9], (1, O), 1.0 / math.sqrt(F2)),
    }


if __name__ == "__main__":
    key = jax.random.PRNGKey(0)
    pkey, xkey = jax.random.split(key)
    params = init_params(pkey)
    x = jax.random.normal(xkey, (BATCH, SEQ, Config.embedding_size), jnp.float32)

    out = lstm_attention_forward(x, params)
    out = jax.block_until_ready(out)

    ref = reference_forward(x, params)
    assert out.shape == (BATCH, OUTPUT_SIZE)
    np.testing.assert_allclose(np.asarray(out), np.asarray(ref),
                               rtol=1e-4, atol=1e-4)
    print("KERNEL_OK")
</pallas_src>

<mosaic_0001>
module attributes {stable_mosaic.version = 11 : i64} {
  func.func @lstm_attention_kernel(%arg0: memref<64x16xf32, #tpu.memory_space<vmem>>, %arg1: memref<16x128xf32, #tpu.memory_space<vmem>>, %arg2: memref<32x128xf32, #tpu.memory_space<vmem>>, %arg3: memref<1x128xf32, #tpu.memory_space<vmem>>, %arg4: memref<32x8xf32, #tpu.memory_space<vmem>>, %arg5: memref<32x8xf32, #tpu.memory_space<vmem>>, %arg6: memref<1x8xf32, #tpu.memory_space<vmem>>, %arg7: memref<32x16xf32, #tpu.memory_space<vmem>>, %arg8: memref<1x16xf32, #tpu.memory_space<vmem>>, %arg9: memref<16x4xf32, #tpu.memory_space<vmem>>, %arg10: memref<1x4xf32, #tpu.memory_space<vmem>>, %arg11: memref<8x4xf32, #tpu.memory_space<vmem>>) attributes {dimension_semantics = [], scalar_prefetch = 0 : i64, scratch_operands = 0 : i64, tpu.core_type = #tpu.core_type<tc>} {
    %c0 = arith.constant 0 : index
    %c0_0 = arith.constant 0 : index
    %0 = vector.load %arg2[%c0, %c0_0] : memref<32x128xf32, #tpu.memory_space<vmem>>, vector<32x128xf32>
    %c0_1 = arith.constant 0 : index
    %c0_2 = arith.constant 0 : index
    %1 = vector.load %arg0[%c0_1, %c0_2] : memref<64x16xf32, #tpu.memory_space<vmem>>, vector<64x16xf32>
    %c0_3 = arith.constant 0 : index
    %c0_4 = arith.constant 0 : index
    %2 = vector.load %arg1[%c0_3, %c0_4] : memref<16x128xf32, #tpu.memory_space<vmem>>, vector<16x128xf32>
    %cst = arith.constant dense<0.000000e+00> : vector<64x128xf32>
    %3 = tpu.matmul %1, %2, %cst {dimension_numbers = #tpu.dot_dimension_numbers<[1], [0], [0], [1], [0, 0, 1, 1], [], []>} : vector<64x16xf32>, vector<16x128xf32>, vector<64x128xf32> -> vector<64x128xf32>
    %c0_5 = arith.constant 0 : index
    %c0_6 = arith.constant 0 : index
    %4 = vector.load %arg3[%c0_5, %c0_6] : memref<1x128xf32, #tpu.memory_space<vmem>>, vector<1x128xf32>
    %5 = vector.broadcast %4 : vector<1x128xf32> to vector<64x128xf32>
    %6 = arith.addf %3, %5 : vector<64x128xf32>
    %7 = tpu.iota {dimensions = array<i32: 1>} : vector<8x128xi32>
    %c64_i32 = arith.constant 64 : i32
    %8 = vector.broadcast %c64_i32 : i32 to vector<8x128xi32>
    %9 = arith.cmpi sge, %7, %8 : vector<8x128xi32>
    %c96_i32 = arith.constant 96 : i32
    %10 = vector.broadcast %c96_i32 : i32 to vector<8x128xi32>
    %11 = arith.cmpi slt, %7, %10 : vector<8x128xi32>
    %12 = arith.andi %9, %11 : vector<8x128xi1>
    %cst_7 = arith.constant 0.000000e+00 : f32
    %13 = vector.broadcast %cst_7 : f32 to vector<8x32xf32>
    %cst_8 = arith.constant 0.000000e+00 : f32
    %14 = vector.broadcast %cst_8 : f32 to vector<8x32xf32>
    %15 = vector.extract_strided_slice %6 {offsets = [0, 0], sizes = [8, 128], strides = [1, 1]} : vector<64x128xf32> to vector<8x128xf32>
    %cst_9 = arith.constant dense<0.000000e+00> : vector<8x128xf32>
    %16 = tpu.matmul %13, %0, %cst_9 {dimension_numbers = #tpu.dot_dimension_numbers<[1], [0], [0], [1], [0, 0, 1, 1], [], []>} : vector<8x32xf32>, vector<32x128xf32>, vector<8x128xf32> -> vector<8x128xf32>
    %17 = arith.addf %15, %16 : vector<8x128xf32>
    %cst_10 = arith.constant 5.000000e-01 : f32
    %18 = vector.broadcast %cst_10 : f32 to vector<8x128xf32>
    %19 = arith.mulf %18, %17 : vector<8x128xf32>
    %20 = arith.select %12, %17, %19 : vector<8x128xi1>, vector<8x128xf32>
    %21 = math.tanh %20 : vector<8x128xf32>
    %cst_11 = arith.constant 1.000000e+00 : f32
    %22 = vector.broadcast %cst_11 : f32 to vector<8x128xf32>
    %23 = arith.addf %21, %22 : vector<8x128xf32>
    %cst_12 = arith.constant 5.000000e-01 : f32
    %24 = vector.broadcast %cst_12 : f32 to vector<8x128xf32>
    %25 = arith.mulf %24, %23 : vector<8x128xf32>
    %26 = arith.select %12, %21, %25 : vector<8x128xi1>, vector<8x128xf32>
    %27 = vector.extract_strided_slice %26 {offsets = [0, 0], sizes = [8, 32], strides = [1, 1]} : vector<8x128xf32> to vector<8x32xf32>
    %28 = vector.extract_strided_slice %26 {offsets = [0, 32], sizes = [8, 32], strides = [1, 1]} : vector<8x128xf32> to vector<8x32xf32>
    %29 = vector.extract_strided_slice %26 {offsets = [0, 64], sizes = [8, 32], strides = [1, 1]} : vector<8x128xf32> to vector<8x32xf32>
    %30 = vector.extract_strided_slice %26 {offsets = [0, 96], sizes = [8, 32], strides = [1, 1]} : vector<8x128xf32> to vector<8x32xf32>
    %31 = arith.mulf %28, %14 : vector<8x32xf32>
    %32 = arith.mulf %27, %29 : vector<8x32xf32>
    %33 = arith.addf %31, %32 : vector<8x32xf32>
    %34 = math.tanh %33 : vector<8x32xf32>
    %35 = arith.mulf %30, %34 : vector<8x32xf32>
    %36 = vector.extract_strided_slice %6 {offsets = [8, 0], sizes = [8, 128], strides = [1, 1]} : vector<64x128xf32> to vector<8x128xf32>
    %cst_13 = arith.constant dense<0.000000e+00> : vector<8x128xf32>
    %37 = tpu.matmul %35, %0, %cst_13 {dimension_numbers = #tpu.dot_dimension_numbers<[1], [0], [0], [1], [0, 0, 1, 1], [], []>} : vector<8x32xf32>, vector<32x128xf32>, vector<8x128xf32> -> vector<8x128xf32>
    %38 = arith.addf %36, %37 : vector<8x128xf32>
    %cst_14 = arith.constant 5.000000e-01 : f32
    %39 = vector.broadcast %cst_14 : f32 to vector<8x128xf32>
    %40 = arith.mulf %39, %38 : vector<8x128xf32>
    %41 = arith.select %12, %38, %40 : vector<8x128xi1>, vector<8x128xf32>
    %42 = math.tanh %41 : vector<8x128xf32>
    %cst_15 = arith.constant 1.000000e+00 : f32
    %43 = vector.broadcast %cst_15 : f32 to vector<8x128xf32>
    %44 = arith.addf %42, %43 : vector<8x128xf32>
    %cst_16 = arith.constant 5.000000e-01 : f32
    %45 = vector.broadcast %cst_16 : f32 to vector<8x128xf32>
    %46 = arith.mulf %45, %44 : vector<8x128xf32>
    %47 = arith.select %12, %42, %46 : vector<8x128xi1>, vector<8x128xf32>
    %48 = vector.extract_strided_slice %47 {offsets = [0, 0], sizes = [8, 32], strides = [1, 1]} : vector<8x128xf32> to vector<8x32xf32>
    %49 = vector.extract_strided_slice %47 {offsets = [0, 32], sizes = [8, 32], strides = [1, 1]} : vector<8x128xf32> to vector<8x32xf32>
    %50 = vector.extract_strided_slice %47 {offsets = [0, 64], sizes = [8, 32], strides = [1, 1]} : vector<8x128xf32> to vector<8x32xf32>
    %51 = vector.extract_strided_slice %47 {offsets = [0, 96], sizes = [8, 32], strides = [1, 1]} : vector<8x128xf32> to vector<8x32xf32>
    %52 = arith.mulf %49, %33 : vector<8x32xf32>
    %53 = arith.mulf %48, %50 : vector<8x32xf32>
    %54 = arith.addf %52, %53 : vector<8x32xf32>
    %55 = math.tanh %54 : vector<8x32xf32>
    %56 = arith.mulf %51, %55 : vector<8x32xf32>
    %57 = vector.extract_strided_slice %6 {offsets = [16, 0], sizes = [8, 128], strides = [1, 1]} : vector<64x128xf32> to vector<8x128xf32>
    %cst_17 = arith.constant dense<0.000000e+00> : vector<8x128xf32>
    %58 = tpu.matmul %56, %0, %cst_17 {dimension_numbers = #tpu.dot_dimension_numbers<[1], [0], [0], [1], [0, 0, 1, 1], [], []>} : vector<8x32xf32>, vector<32x128xf32>, vector<8x128xf32> -> vector<8x128xf32>
    %59 = arith.addf %57, %58 : vector<8x128xf32>
    %cst_18 = arith.constant 5.000000e-01 : f32
    %60 = vector.broadcast %cst_18 : f32 to vector<8x128xf32>
    %61 = arith.mulf %60, %59 : vector<8x128xf32>
    %62 = arith.select %12, %59, %61 : vector<8x128xi1>, vector<8x128xf32>
    %63 = math.tanh %62 : vector<8x128xf32>
    %cst_19 = arith.constant 1.000000e+00 : f32
    %64 = vector.broadcast %cst_19 : f32 to vector<8x128xf32>
    %65 = arith.addf %63, %64 : vector<8x128xf32>
    %cst_20 = arith.constant 5.000000e-01 : f32
    %66 = vector.broadcast %cst_20 : f32 to vector<8x128xf32>
    %67 = arith.mulf %66, %65 : vector<8x128xf32>
    %68 = arith.select %12, %63, %67 : vector<8x128xi1>, vector<8x128xf32>
    %69 = vector.extract_strided_slice %68 {offsets = [0, 0], sizes = [8, 32], strides = [1, 1]} : vector<8x128xf32> to vector<8x32xf32>
    %70 = vector.extract_strided_slice %68 {offsets = [0, 32], sizes = [8, 32], strides = [1, 1]} : vector<8x128xf32> to vector<8x32xf32>
    %71 = vector.extract_strided_slice %68 {offsets = [0, 64], sizes = [8, 32], strides = [1, 1]} : vector<8x128xf32> to vector<8x32xf32>
    %72 = vector.extract_strided_slice %68 {offsets = [0, 96], sizes = [8, 32], strides = [1, 1]} : vector<8x128xf32> to vector<8x32xf32>
    %73 = arith.mulf %70, %54 : vector<8x32xf32>
    %74 = arith.mulf %69, %71 : vector<8x32xf32>
    %75 = arith.addf %73, %74 : vector<8x32xf32>
    %76 = math.tanh %75 : vector<8x32xf32>
    %77 = arith.mulf %72, %76 : vector<8x32xf32>
    %78 = vector.extract_strided_slice %6 {offsets = [24, 0], sizes = [8, 128], strides = [1, 1]} : vector<64x128xf32> to vector<8x128xf32>
    %cst_21 = arith.constant dense<0.000000e+00> : vector<8x128xf32>
    %79 = tpu.matmul %77, %0, %cst_21 {dimension_numbers = #tpu.dot_dimension_numbers<[1], [0], [0], [1], [0, 0, 1, 1], [], []>} : vector<8x32xf32>, vector<32x128xf32>, vector<8x128xf32> -> vector<8x128xf32>
    %80 = arith.addf %78, %79 : vector<8x128xf32>
    %cst_22 = arith.constant 5.000000e-01 : f32
    %81 = vector.broadcast %cst_22 : f32 to vector<8x128xf32>
    %82 = arith.mulf %81, %80 : vector<8x128xf32>
    %83 = arith.select %12, %80, %82 : vector<8x128xi1>, vector<8x128xf32>
    %84 = math.tanh %83 : vector<8x128xf32>
    %cst_23 = arith.constant 1.000000e+00 : f32
    %85 = vector.broadcast %cst_23 : f32 to vector<8x128xf32>
    %86 = arith.addf %84, %85 : vector<8x128xf32>
    %cst_24 = arith.constant 5.000000e-01 : f32
    %87 = vector.broadcast %cst_24 : f32 to vector<8x128xf32>
    %88 = arith.mulf %87, %86 : vector<8x128xf32>
    %89 = arith.select %12, %84, %88 : vector<8x128xi1>, vector<8x128xf32>
    %90 = vector.extract_strided_slice %89 {offsets = [0, 0], sizes = [8, 32], strides = [1, 1]} : vector<8x128xf32> to vector<8x32xf32>
    %91 = vector.extract_strided_slice %89 {offsets = [0, 32], sizes = [8, 32], strides = [1, 1]} : vector<8x128xf32> to vector<8x32xf32>
    %92 = vector.extract_strided_slice %89 {offsets = [0, 64], sizes = [8, 32], strides = [1, 1]} : vector<8x128xf32> to vector<8x32xf32>
    %93 = vector.extract_strided_slice %89 {offsets = [0, 96], sizes = [8, 32], strides = [1, 1]} : vector<8x128xf32> to vector<8x32xf32>
    %94 = arith.mulf %91, %75 : vector<8x32xf32>
    %95 = arith.mulf %90, %92 : vector<8x32xf32>
    %96 = arith.addf %94, %95 : vector<8x32xf32>
    %97 = math.tanh %96 : vector<8x32xf32>
    %98 = arith.mulf %93, %97 : vector<8x32xf32>
    %99 = vector.extract_strided_slice %6 {offsets = [32, 0], sizes = [8, 128], strides = [1, 1]} : vector<64x128xf32> to vector<8x128xf32>
    %cst_25 = arith.constant dense<0.000000e+00> : vector<8x128xf32>
    %100 = tpu.matmul %98, %0, %cst_25 {dimension_numbers = #tpu.dot_dimension_numbers<[1], [0], [0], [1], [0, 0, 1, 1], [], []>} : vector<8x32xf32>, vector<32x128xf32>, vector<8x128xf32> -> vector<8x128xf32>
    %101 = arith.addf %99, %100 : vector<8x128xf32>
    %cst_26 = arith.constant 5.000000e-01 : f32
    %102 = vector.broadcast %cst_26 : f32 to vector<8x128xf32>
    %103 = arith.mulf %102, %101 : vector<8x128xf32>
    %104 = arith.select %12, %101, %103 : vector<8x128xi1>, vector<8x128xf32>
    %105 = math.tanh %104 : vector<8x128xf32>
    %cst_27 = arith.constant 1.000000e+00 : f32
    %106 = vector.broadcast %cst_27 : f32 to vector<8x128xf32>
    %107 = arith.addf %105, %106 : vector<8x128xf32>
    %cst_28 = arith.constant 5.000000e-01 : f32
    %108 = vector.broadcast %cst_28 : f32 to vector<8x128xf32>
    %109 = arith.mulf %108, %107 : vector<8x128xf32>
    %110 = arith.select %12, %105, %109 : vector<8x128xi1>, vector<8x128xf32>
    %111 = vector.extract_strided_slice %110 {offsets = [0, 0], sizes = [8, 32], strides = [1, 1]} : vector<8x128xf32> to vector<8x32xf32>
    %112 = vector.extract_strided_slice %110 {offsets = [0, 32], sizes = [8, 32], strides = [1, 1]} : vector<8x128xf32> to vector<8x32xf32>
    %113 = vector.extract_strided_slice %110 {offsets = [0, 64], sizes = [8, 32], strides = [1, 1]} : vector<8x128xf32> to vector<8x32xf32>
    %114 = vector.extract_strided_slice %110 {offsets = [0, 96], sizes = [8, 32], strides = [1, 1]} : vector<8x128xf32> to vector<8x32xf32>
    %115 = arith.mulf %112, %96 : vector<8x32xf32>
    %116 = arith.mulf %111, %113 : vector<8x32xf32>
    %117 = arith.addf %115, %116 : vector<8x32xf32>
    %118 = math.tanh %117 : vector<8x32xf32>
    %119 = arith.mulf %114, %118 : vector<8x32xf32>
    %120 = vector.extract_strided_slice %6 {offsets = [40, 0], sizes = [8, 128], strides = [1, 1]} : vector<64x128xf32> to vector<8x128xf32>
    %cst_29 = arith.constant dense<0.000000e+00> : vector<8x128xf32>
    %121 = tpu.matmul %119, %0, %cst_29 {dimension_numbers = #tpu.dot_dimension_numbers<[1], [0], [0], [1], [0, 0, 1, 1], [], []>} : vector<8x32xf32>, vector<32x128xf32>, vector<8x128xf32> -> vector<8x128xf32>
    %122 = arith.addf %120, %121 : vector<8x128xf32>
    %cst_30 = arith.constant 5.000000e-01 : f32
    %123 = vector.broadcast %cst_30 : f32 to vector<8x128xf32>
    %124 = arith.mulf %123, %122 : vector<8x128xf32>
    %125 = arith.select %12, %122, %124 : vector<8x128xi1>, vector<8x128xf32>
    %126 = math.tanh %125 : vector<8x128xf32>
    %cst_31 = arith.constant 1.000000e+00 : f32
    %127 = vector.broadcast %cst_31 : f32 to vector<8x128xf32>
    %128 = arith.addf %126, %127 : vector<8x128xf32>
    %cst_32 = arith.constant 5.000000e-01 : f32
    %129 = vector.broadcast %cst_32 : f32 to vector<8x128xf32>
    %130 = arith.mulf %129, %128 : vector<8x128xf32>
    %131 = arith.select %12, %126, %130 : vector<8x128xi1>, vector<8x128xf32>
    %132 = vector.extract_strided_slice %131 {offsets = [0, 0], sizes = [8, 32], strides = [1, 1]} : vector<8x128xf32> to vector<8x32xf32>
    %133 = vector.extract_strided_slice %131 {offsets = [0, 32], sizes = [8, 32], strides = [1, 1]} : vector<8x128xf32> to vector<8x32xf32>
    %134 = vector.extract_strided_slice %131 {offsets = [0, 64], sizes = [8, 32], strides = [1, 1]} : vector<8x128xf32> to vector<8x32xf32>
    %135 = vector.extract_strided_slice %131 {offsets = [0, 96], sizes = [8, 32], strides = [1, 1]} : vector<8x128xf32> to vector<8x32xf32>
    %136 = arith.mulf %133, %117 : vector<8x32xf32>
    %137 = arith.mulf %132, %134 : vector<8x32xf32>
    %138 = arith.addf %136, %137 : vector<8x32xf32>
    %139 = math.tanh %138 : vector<8x32xf32>
    %140 = arith.mulf %135, %139 : vector<8x32xf32>
    %141 = vector.extract_strided_slice %6 {offsets = [48, 0], sizes = [8, 128], strides = [1, 1]} : vector<64x128xf32> to vector<8x128xf32>
    %cst_33 = arith.constant dense<0.000000e+00> : vector<8x128xf32>
    %142 = tpu.matmul %140, %0, %cst_33 {dimension_numbers = #tpu.dot_dimension_numbers<[1], [0], [0], [1], [0, 0, 1, 1], [], []>} : vector<8x32xf32>, vector<32x128xf32>, vector<8x128xf32> -> vector<8x128xf32>
    %143 = arith.addf %141, %142 : vector<8x128xf32>
    %cst_34 = arith.constant 5.000000e-01 : f32
    %144 = vector.broadcast %cst_34 : f32 to vector<8x128xf32>
    %145 = arith.mulf %144, %143 : vector<8x128xf32>
    %146 = arith.select %12, %143, %145 : vector<8x128xi1>, vector<8x128xf32>
    %147 = math.tanh %146 : vector<8x128xf32>
    %cst_35 = arith.constant 1.000000e+00 : f32
    %148 = vector.broadcast %cst_35 : f32 to vector<8x128xf32>
    %149 = arith.addf %147, %148 : vector<8x128xf32>
    %cst_36 = arith.constant 5.000000e-01 : f32
    %150 = vector.broadcast %cst_36 : f32 to vector<8x128xf32>
    %151 = arith.mulf %150, %149 : vector<8x128xf32>
    %152 = arith.select %12, %147, %151 : vector<8x128xi1>, vector<8x128xf32>
    %153 = vector.extract_strided_slice %152 {offsets = [0, 0], sizes = [8, 32], strides = [1, 1]} : vector<8x128xf32> to vector<8x32xf32>
    %154 = vector.extract_strided_slice %152 {offsets = [0, 32], sizes = [8, 32], strides = [1, 1]} : vector<8x128xf32> to vector<8x32xf32>
    %155 = vector.extract_strided_slice %152 {offsets = [0, 64], sizes = [8, 32], strides = [1, 1]} : vector<8x128xf32> to vector<8x32xf32>
    %156 = vector.extract_strided_slice %152 {offsets = [0, 96], sizes = [8, 32], strides = [1, 1]} : vector<8x128xf32> to vector<8x32xf32>
    %157 = arith.mulf %154, %138 : vector<8x32xf32>
    %158 = arith.mulf %153, %155 : vector<8x32xf32>
    %159 = arith.addf %157, %158 : vector<8x32xf32>
    %160 = math.tanh %159 : vector<8x32xf32>
    %161 = arith.mulf %156, %160 : vector<8x32xf32>
    %162 = vector.extract_strided_slice %6 {offsets = [56, 0], sizes = [8, 128], strides = [1, 1]} : vector<64x128xf32> to vector<8x128xf32>
    %cst_37 = arith.constant dense<0.000000e+00> : vector<8x128xf32>
    %163 = tpu.matmul %161, %0, %cst_37 {dimension_numbers = #tpu.dot_dimension_numbers<[1], [0], [0], [1], [0, 0, 1, 1], [], []>} : vector<8x32xf32>, vector<32x128xf32>, vector<8x128xf32> -> vector<8x128xf32>
    %164 = arith.addf %162, %163 : vector<8x128xf32>
    %cst_38 = arith.constant 5.000000e-01 : f32
    %165 = vector.broadcast %cst_38 : f32 to vector<8x128xf32>
    %166 = arith.mulf %165, %164 : vector<8x128xf32>
    %167 = arith.select %12, %164, %166 : vector<8x128xi1>, vector<8x128xf32>
    %168 = math.tanh %167 : vector<8x128xf32>
    %cst_39 = arith.constant 1.000000e+00 : f32
    %169 = vector.broadcast %cst_39 : f32 to vector<8x128xf32>
    %170 = arith.addf %168, %169 : vector<8x128xf32>
    %cst_40 = arith.constant 5.000000e-01 : f32
    %171 = vector.broadcast %cst_40 : f32 to vector<8x128xf32>
    %172 = arith.mulf %171, %170 : vector<8x128xf32>
    %173 = arith.select %12, %168, %172 : vector<8x128xi1>, vector<8x128xf32>
    %174 = vector.extract_strided_slice %173 {offsets = [0, 0], sizes = [8, 32], strides = [1, 1]} : vector<8x128xf32> to vector<8x32xf32>
    %175 = vector.extract_strided_slice %173 {offsets = [0, 32], sizes = [8, 32], strides = [1, 1]} : vector<8x128xf32> to vector<8x32xf32>
    %176 = vector.extract_strided_slice %173 {offsets = [0, 64], sizes = [8, 32], strides = [1, 1]} : vector<8x128xf32> to vector<8x32xf32>
    %177 = vector.extract_strided_slice %173 {offsets = [0, 96], sizes = [8, 32], strides = [1, 1]} : vector<8x128xf32> to vector<8x32xf32>
    %178 = arith.mulf %175, %159 : vector<8x32xf32>
    %179 = arith.mulf %174, %176 : vector<8x32xf32>
    %180 = arith.addf %178, %179 : vector<8x32xf32>
    %181 = math.tanh %180 : vector<8x32xf32>
    %182 = arith.mulf %177, %181 : vector<8x32xf32>
    %c0_41 = arith.constant 0 : index
    %c0_42 = arith.constant 0 : index
    %183 = vector.load %arg4[%c0_41, %c0_42] : memref<32x8xf32, #tpu.memory_space<vmem>>, vector<32x8xf32>
    %cst_43 = arith.constant dense<0.000000e+00> : vector<8x8xf32>
    %184 = tpu.matmul %182, %183, %cst_43 {dimension_numbers = #tpu.dot_dimension_numbers<[1], [0], [0], [1], [0, 0, 1, 1], [], []>} : vector<8x32xf32>, vector<32x8xf32>, vector<8x8xf32> -> vector<8x8xf32>
    %c0_44 = arith.constant 0 : index
    %c0_45 = arith.constant 0 : index
    %185 = vector.load %arg5[%c0_44, %c0_45] : memref<32x8xf32, #tpu.memory_space<vmem>>, vector<32x8xf32>
    %cst_46 = arith.constant dense<0.000000e+00> : vector<8x8xf32>
    %186 = tpu.matmul %180, %185, %cst_46 {dimension_numbers = #tpu.dot_dimension_numbers<[1], [0], [0], [1], [0, 0, 1, 1], [], []>} : vector<8x32xf32>, vector<32x8xf32>, vector<8x8xf32> -> vector<8x8xf32>
    %187 = arith.addf %184, %186 : vector<8x8xf32>
    %c0_47 = arith.constant 0 : index
    %c0_48 = arith.constant 0 : index
    %188 = vector.load %arg6[%c0_47, %c0_48] : memref<1x8xf32, #tpu.memory_space<vmem>>, vector<1x8xf32>
    %189 = vector.broadcast %188 : vector<1x8xf32> to vector<8x8xf32>
    %190 = arith.addf %187, %189 : vector<8x8xf32>
    %cst_49 = arith.constant dense<0xFF800000> : vector<8xf32>
    %191 = vector.multi_reduction <maximumf>, %190, %cst_49 [1] : vector<8x8xf32> to vector<8xf32>
    %192 = vector.shape_cast %191 : vector<8xf32> to vector<8x1xf32>
    %193 = vector.broadcast %192 : vector<8x1xf32> to vector<8x8xf32>
    %194 = arith.subf %190, %193 : vector<8x8xf32>
    %195 = math.exp %194 : vector<8x8xf32>
    %cst_50 = arith.constant dense<0.000000e+00> : vector<8xf32>
    %196 = vector.multi_reduction <add>, %195, %cst_50 [1] : vector<8x8xf32> to vector<8xf32>
    %197 = vector.shape_cast %196 : vector<8xf32> to vector<8x1xf32>
    %198 = vector.broadcast %197 : vector<8x1xf32> to vector<8x8xf32>
    %199 = arith.divf %195, %198 : vector<8x8xf32>
    %200 = vector.extract_strided_slice %199 {offsets = [0, 0], sizes = [8, 1], strides = [1, 1]} : vector<8x8xf32> to vector<8x1xf32>
    %201 = vector.broadcast %200 : vector<8x1xf32> to vector<8x32xf32>
    %202 = arith.mulf %201, %35 : vector<8x32xf32>
    %203 = vector.extract_strided_slice %199 {offsets = [0, 1], sizes = [8, 1], strides = [1, 1]} : vector<8x8xf32> to vector<8x1xf32>
    %204 = vector.broadcast %203 : vector<8x1xf32> to vector<8x32xf32>
    %205 = arith.mulf %204, %56 : vector<8x32xf32>
    %206 = arith.addf %202, %205 : vector<8x32xf32>
    %207 = vector.extract_strided_slice %199 {offsets = [0, 2], sizes = [8, 1], strides = [1, 1]} : vector<8x8xf32> to vector<8x1xf32>
    %208 = vector.broadcast %207 : vector<8x1xf32> to vector<8x32xf32>
    %209 = arith.mulf %208, %77 : vector<8x32xf32>
    %210 = arith.addf %206, %209 : vector<8x32xf32>
    %211 = vector.extract_strided_slice %199 {offsets = [0, 3], sizes = [8, 1], strides = [1, 1]} : vector<8x8xf32> to vector<8x1xf32>
    %212 = vector.broadcast %211 : vector<8x1xf32> to vector<8x32xf32>
    %213 = arith.mulf %212, %98 : vector<8x32xf32>
    %214 = arith.addf %210, %213 : vector<8x32xf32>
    %215 = vector.extract_strided_slice %199 {offsets = [0, 4], sizes = [8, 1], strides = [1, 1]} : vector<8x8xf32> to vector<8x1xf32>
    %216 = vector.broadcast %215 : vector<8x1xf32> to vector<8x32xf32>
    %217 = arith.mulf %216, %119 : vector<8x32xf32>
    %218 = arith.addf %214, %217 : vector<8x32xf32>
    %219 = vector.extract_strided_slice %199 {offsets = [0, 5], sizes = [8, 1], strides = [1, 1]} : vector<8x8xf32> to vector<8x1xf32>
    %220 = vector.broadcast %219 : vector<8x1xf32> to vector<8x32xf32>
    %221 = arith.mulf %220, %140 : vector<8x32xf32>
    %222 = arith.addf %218, %221 : vector<8x32xf32>
    %223 = vector.extract_strided_slice %199 {offsets = [0, 6], sizes = [8, 1], strides = [1, 1]} : vector<8x8xf32> to vector<8x1xf32>
    %224 = vector.broadcast %223 : vector<8x1xf32> to vector<8x32xf32>
    %225 = arith.mulf %224, %161 : vector<8x32xf32>
    %226 = arith.addf %222, %225 : vector<8x32xf32>
    %227 = vector.extract_strided_slice %199 {offsets = [0, 7], sizes = [8, 1], strides = [1, 1]} : vector<8x8xf32> to vector<8x1xf32>
    %228 = vector.broadcast %227 : vector<8x1xf32> to vector<8x32xf32>
    %229 = arith.mulf %228, %182 : vector<8x32xf32>
    %230 = arith.addf %226, %229 : vector<8x32xf32>
    %cst_51 = arith.constant 0.000000e+00 : f32
    %231 = vector.broadcast %cst_51 : f32 to vector<8x32xf32>
    %232 = arith.maximumf %230, %231 : vector<8x32xf32>
    %c0_52 = arith.constant 0 : index
    %c0_53 = arith.constant 0 : index
    %233 = vector.load %arg7[%c0_52, %c0_53] : memref<32x16xf32, #tpu.memory_space<vmem>>, vector<32x16xf32>
    %cst_54 = arith.constant dense<0.000000e+00> : vector<8x16xf32>
    %234 = tpu.matmul %232, %233, %cst_54 {dimension_numbers = #tpu.dot_dimension_numbers<[1], [0], [0], [1], [0, 0, 1, 1], [], []>} : vector<8x32xf32>, vector<32x16xf32>, vector<8x16xf32> -> vector<8x16xf32>
    %c0_55 = arith.constant 0 : index
    %c0_56 = arith.constant 0 : index
    %235 = vector.load %arg8[%c0_55, %c0_56] : memref<1x16xf32, #tpu.memory_space<vmem>>, vector<1x16xf32>
    %236 = vector.broadcast %235 : vector<1x16xf32> to vector<8x16xf32>
    %237 = arith.addf %234, %236 : vector<8x16xf32>
    %cst_57 = arith.constant 0.000000e+00 : f32
    %238 = vector.broadcast %cst_57 : f32 to vector<8x16xf32>
    %239 = arith.maximumf %237, %238 : vector<8x16xf32>
    %c0_58 = arith.constant 0 : index
    %c0_59 = arith.constant 0 : index
    %240 = vector.load %arg9[%c0_58, %c0_59] : memref<16x4xf32, #tpu.memory_space<vmem>>, vector<16x4xf32>
    %cst_60 = arith.constant dense<0.000000e+00> : vector<8x4xf32>
    %241 = tpu.matmul %239, %240, %cst_60 {dimension_numbers = #tpu.dot_dimension_numbers<[1], [0], [0], [1], [0, 0, 1, 1], [], []>} : vector<8x16xf32>, vector<16x4xf32>, vector<8x4xf32> -> vector<8x4xf32>
    %c0_61 = arith.constant 0 : index
    %c0_62 = arith.constant 0 : index
    %242 = vector.load %arg10[%c0_61, %c0_62] : memref<1x4xf32, #tpu.memory_space<vmem>>, vector<1x4xf32>
    %243 = vector.broadcast %242 : vector<1x4xf32> to vector<8x4xf32>
    %244 = arith.addf %241, %243 : vector<8x4xf32>
    %cst_63 = arith.constant dense<0xFF800000> : vector<8xf32>
    %245 = vector.multi_reduction <maximumf>, %244, %cst_63 [1] : vector<8x4xf32> to vector<8xf32>
    %246 = vector.shape_cast %245 : vector<8xf32> to vector<8x1xf32>
    %247 = vector.broadcast %246 : vector<8x1xf32> to vector<8x4xf32>
    %248 = arith.subf %244, %247 : vector<8x4xf32>
    %249 = math.exp %248 : vector<8x4xf32>
    %cst_64 = arith.constant dense<0.000000e+00> : vector<8xf32>
    %250 = vector.multi_reduction <add>, %249, %cst_64 [1] : vector<8x4xf32> to vector<8xf32>
    %251 = vector.shape_cast %250 : vector<8xf32> to vector<8x1xf32>
    %252 = math.log %251 : vector<8x1xf32>
    %253 = arith.addf %252, %246 : vector<8x1xf32>
    %254 = vector.broadcast %253 : vector<8x1xf32> to vector<8x4xf32>
    %255 = arith.subf %244, %254 : vector<8x4xf32>
    %c0_65 = arith.constant 0 : index
    %c0_66 = arith.constant 0 : index
    %256 = vector.load %arg11[%c0_65, %c0_66] : memref<8x4xf32, #tpu.memory_space<vmem>>, vector<8x4xf32>
    tpu.vector_store %arg11[%c0_65, %c0_66], %255 {strides = array<i32>} : memref<8x4xf32, #tpu.memory_space<vmem>>, vector<8x4xf32>,
    return
  }
}

</mosaic_0001>

<bundles_post_ra>
// kernel: tpu_custom_call.1
= control target key start
LH: loop header
LB: loop body
LE: loop exit
PB: predicated region body
PF: predicated region fallthrough
CT: control target
= control target key end

     0   :  { %vm59_vm0 = vcmask 130048   ;;  %v1771_v0 = vmov 0.0|0.0   ;;  %vm1772_vm1 = vmmov 0   ;;  %v1773_v4 = vmov 0.0   ;;  %s1775_s14 = smov 32   ;;  %s1776_s13 = smov 96   ;;  %s2157_s1 = inlined_call_operand.vmem [shape: f32[16,128], index: 1, kind: input, shape index: {}]   ;;  %s2158_s2 = inlined_call_operand.vmem [shape: f32[32,128], index: 2, kind: input, shape index: {}]   ;;  %s2159_s0 = inlined_call_operand.vmem [shape: f32[64,16], index: 0, kind: input, shape index: {}]   ;;  %s2160_s3 = inlined_call_operand.vmem [shape: f32[1,128], index: 3, kind: input, shape index: {}]   ;;  %s2161_s5 = inlined_call_operand.vmem [shape: f32[32,8], index: 5, kind: input, shape index: {}]   ;;  %s2162_s4 = inlined_call_operand.vmem [shape: f32[32,8], index: 4, kind: input, shape index: {}]   ;;  %s2163_s6 = inlined_call_operand.vmem [shape: f32[1,8], index: 6, kind: input, shape index: {}]   ;;  %s2164_s7 = inlined_call_operand.vmem [shape: f32[32,16], index: 7, kind: input, shape index: {}]   ;;  %s2165_s9 = inlined_call_operand.vmem [shape: f32[16,4], index: 9, kind: input, shape index: {}]   ;;  %s2166_s8 = inlined_call_operand.vmem [shape: f32[1,16], index: 8, kind: input, shape index: {}]   ;;  %s2167_s10 = inlined_call_operand.vmem [shape: f32[1,4], index: 10, kind: input, shape index: {}]   ;;  %s2168_s11 = inlined_call_operand.vmem [shape: f32[8,4], index: 11, kind: output, shape index: {}]  }
   0x1   :  { %1639 = vmatprep.subr.bf16.mxu1 %v1771_v0  ;;  %v50_v1 = vld [vmem:[%s2157_s1] sm:$0xff]  ;;  %v51_v2 = vld [vmem:[%s2157_s1 + $0x8] sm:$0xff]  ;;  %1515 = vmatprep.mubr.msk.f32.mxu1 %vm1772_vm1, %v1773_v4  ;;  %v40_v9 = vld [vmem:[%s2158_s2 + $0x10] sm:$0xff]  ;;  %v189_v13 = vlaneseq  ;;  %vm194_vm5 = vcmask 261120   ;;  %vm1151_vm6 = vcmask 64512   ;;  %vm1381_vm7 = vcmask 31744  }
   0x2   :  { %v38_v3 = vld [vmem:[%s2158_s2] sm:$0xff]  ;;  %v1635_v5 = vpack.c.bf16 %v51_v2, %v50_v1  ;;  %v39_v6 = vld [vmem:[%s2158_s2 + $0x8] sm:$0xff]  ;;  %v41_v10 = vld [vmem:[%s2158_s2 + $0x18] sm:$0xff] }
   0x3   :  { %v42_v7 = vld [vmem:[%s2159_s0] sm:$0xff]  ;;  %v1863_v8 = vpack.c.bf16 %v39_v6, %v38_v3  ;;  %v43_v11 = vld [vmem:[%s2159_s0 + $0x8] sm:$0xff]  ;;  %v1876_v12 = vpack.c.bf16 %v41_v10, %v40_v9  ;;  %v190_v15 = vand.u32 127, %v189_v13  ;;  %v44_v53 = vld [vmem:[%s2159_s0 + $0x10] sm:$0xff] }
   0x4   :  { %1495 = vmatprep.mubr.msk.f32.mxu0 %vm59_vm0, %v42_v7  ;;  %1636 = vmatprep.subr.bf16.mxu0 %v1635_v5  ;;  %v1897_v14 = vld [vmem:[%s2160_s3] ss:$0 sm:$0xff]  ;;  %s1774_s3 = smov 64   ;;  %v45_v54 = vld [vmem:[%s2159_s0 + $0x18] sm:$0xff]  ;;  %v47_v56 = vld [vmem:[%s2159_s0 + $0x28] sm:$0xff] }
   0x5   :  { %1641 = vmatpush3.bf16.msra.mxu1 %v1863_v8  ;;  %1638 = vmatpush3.bf16.msra.mxu0 %v1635_v5  ;;  %vm191_vm2 = vcmp.ge.s32.totalorder %v190_v15, 64  ;;  %vm192_vm3 = vcmp.lt.s32.totalorder %v190_v15, 96  ;;  %v46_v55 = vld [vmem:[%s2159_s0 + $0x20] sm:$0xff]  ;;  %v48_v57 = vld [vmem:[%s2159_s0 + $0x30] sm:$0xff]  ;;  %v49_v58 = vld [vmem:[%s2159_s0 + $0x38] sm:$0xff] }
   0x6   :  { %1642 = vmatprep.subr.bf16.mxu1 %v1771_v0  ;;  %1651 = vmatprep.subr.bf16.mxu0 %v1771_v0  ;;  %vm1900_vm4 = vmand %vm191_vm2, %vm192_vm3 }
   0x8   :  { %1496 = vmatmul.mubr.msk.f32.vlgmr.msra.gmra.mrb[0].mxu0 %vm59_vm0, %v43_v11 }
   0x9   :  { %1644 = vmatpush3.bf16.msra.mxu1 %v1876_v12  ;;  %1653 = vmatpush3.bf16.msra.mxu0 %v1863_v8 }
   0xa   :  { %1645 = vmatprep.subr.bf16.mxu1 %v1771_v0  ;;  %1654 = vmatprep.subr.bf16.mxu0 %v1771_v0 }
   0xb   :  { %1498 = vmatprep.mubr.msk.f32.mxu0 %vm59_vm0, %v44_v53 }
   0xc   :  { %1516 = vmatmul.mubr.f32.vlgmr.msra.gmra.mrb[0].mxu1 %v1773_v4  ;;  %1499 = vmatmul.mubr.msk.f32.gmra.mrb[2].mxu0 %vm59_vm0, %v45_v54 }
   0xd   :  { %1647 = vmatpush3.bf16.msra.mxu1 %v1863_v8  ;;  %1526 = vmatprep.mubr.msk.f32.mxu1 %vm1772_vm1, %v1773_v4 }
   0xe   :  { %1648 = vmatprep.subr.bf16.mxu1 %v1771_v0  ;;  %1656 = vmatpush3.bf16.msra.mxu0 %v1876_v12 }
   0xf   :  { %1663 = vmatprep.subr.bf16.mxu0 %v1771_v0  ;;  %1501 = vmatprep.mubr.msk.f32.mxu0 %vm59_vm0, %v46_v55 }
  0x10   :  { %1502 = vmatmul.mubr.msk.f32.gmra.mrb[4].mxu0 %vm59_vm0, %v47_v56 }
  0x11   :  { %1650 = vmatpush3.bf16.msra.mxu1 %v1876_v12  ;;  %1504 = vmatprep.mubr.msk.f32.mxu0 %vm59_vm0, %v48_v57 }
  0x12   :  { %1657 = vmatprep.subr.bf16.mxu1 %v1771_v0 }
  0x14   :  { %1505 = vmatmul.mubr.msk.f32.gmra.mrb[6].mxu0 %vm59_vm0, %v49_v58 }
  0x15   :  { %1537 = vmatprep.mubr.msk.f32.mxu0 %vm1772_vm1, %v1773_v4 }
  0xdb   :  { %v1497_v16 = vpop.f32.mrb[0].mxu0 }
  0xdc   :  { %v150_v17 = vpop.f32.mrb[1].mxu0  ;;  %v156_v38 = vadd.f32 %v1497_v16, %v1897_v14 }
  0xdd   :  { %v151_v18 = vadd.f32 %v1897_v14, %v150_v17 }
  0xdf   :  { %v264_v19 = vpop.f32.mrb[0].mxu1  ;;  %v1500_v62 = vpop.f32.mrb[2].mxu0 }
  0xe0   :  { %v268_v20 = vadd.f32 %v264_v19, %v151_v18  ;;  %v1517_v21 = vpop.f32.mrb[1].mxu1  ;;  %v160_v63 = vpop.f32.mrb[3].mxu0 }
  0xe1   :  { %v161_v7 = vadd.f32 %v1897_v14, %v160_v63 }
  0xe2   :  { %v269_v23 = vmul.f32 0.5, %v268_v20 }
  0xe3   :  { %v1960_v1 = vpop.f32.mrb[4].mxu0 }
  0xe4   :  { %v270_v24 = vsel %vm1900_vm4, %v268_v20, %v269_v23  ;;  %v1962_v2 = vpop.f32.mrb[5].mxu0 }
  0xe5   :  { %1731 = vtanh.f32 %v270_v24 }
  0xe7   :  { %v1964_v3 = vpop.f32.mrb[6].mxu0 }
  0xe8   :  { %v1966_v5 = vpop.f32.mrb[7].mxu0 }
  0xef   :  { %v1732_v25 = vpop.eup %1731 }
  0xf0   :  { %v272_v26 = vadd.f32 1.0, %v1732_v25 }
  0xf2   :  { %v273_v27 = vmul.f32 0.5, %v272_v26 }
  0xf4   :  { %v274_v28 = vsel %vm1900_vm4, %v1732_v25, %v273_v27 }
  0xf5   :  { %277 = vrot.lane.b32.xlu0 %v274_v28, %s1774_s3  ;;  %v275_v31 = vmul.f32 0.0, %v274_v28 }
 0x167   :  { %v278_v29 = vpop.permute.xlu0 %277 }
 0x168   :  { %v280_v30 = vmul.f32 %v278_v29, %v274_v28 }
 0x16a   :  { %282 = vrot.lane.b32.xlu0 %v280_v30, %s1775_s14  ;;  %v166_v30 = vadd.f32 %v1500_v62, %v1897_v14 }
 0x1dc   :  { %v283_v32 = vpop.permute.xlu0 %282 }
 0x1dd   :  { %v285_v33 = vadd.f32 %v283_v32, %v275_v31 }
 0x1df   :  { %1733 = vtanh.f32 %v285_v33 }
 0x1e9   :  { %v1734_v34 = vpop.eup %1733 }
 0x1ea   :  { %288 = vrot.lane.b32.xlu1 %v1734_v34, %s1774_s3 }
 0x25c   :  { %v289_v35 = vpop.permute.xlu1 %288 }
 0x25d   :  { %v1911_v36 = vmul.f32 %v289_v35, %v274_v28 }
 0x25f   :  { %293 = vrot.lane.b32.xlu1 %v1911_v36, %s1775_s14 }
 0x2d1   :  { %v294_v37 = vpop.permute.xlu1 %293 }
 0x2d2   :  { %1527 = vmatmul.mubr.msk.f32.vlgmr.msra.gmra.mrb[2].mxu1 %vm194_vm5, %v294_v37 }
 0x2d3   :  { %1659 = vmatpush3.bf16.msra.mxu1 %v1863_v8  ;;  %1548 = vmatprep.mubr.msk.f32.mxu1 %vm1772_vm1, %v1773_v4 }
 0x2d4   :  { %1660 = vmatprep.subr.bf16.mxu1 %v1771_v0 }
 0x2d7   :  { %1662 = vmatpush3.bf16.msra.mxu1 %v1876_v12 }
 0x2d8   :  { %1669 = vmatprep.subr.bf16.mxu1 %v1771_v0 }
 0x3a5   :  { %v363_v39 = vpop.f32.mrb[2].mxu1 }
 0x3a6   :  { %v367_v40 = vadd.f32 %v363_v39, %v156_v38  ;;  %v1528_v41 = vpop.f32.mrb[3].mxu1 }
 0x3a8   :  { %v368_v42 = vmul.f32 0.5, %v367_v40 }
 0x3aa   :  { %v369_v43 = vsel %vm1900_vm4, %v367_v40, %v368_v42 }
 0x3ab   :  { %1735 = vtanh.f32 %v369_v43 }
 0x3b5   :  { %v1736_v44 = vpop.eup %1735 }
 0x3b6   :  { %v371_v45 = vadd.f32 1.0, %v1736_v44 }
 0x3b8   :  { %v372_v46 = vmul.f32 0.5, %v371_v45 }
 0x3ba   :  { %v373_v47 = vsel %vm1900_vm4, %v1736_v44, %v372_v46 }
 0x3bb   :  { %376 = vrot.lane.b32.xlu0 %v373_v47, %s1774_s3  ;;  %v374_v50 = vmul.f32 %v373_v47, %v285_v33 }
 0x42d   :  { %v377_v48 = vpop.permute.xlu0 %376 }
 0x42e   :  { %v379_v49 = vmul.f32 %v377_v48, %v373_v47 }
 0x430   :  { %381 = vrot.lane.b32.xlu1 %v379_v49, %s1775_s14 }
 0x4a2   :  { %v382_v51 = vpop.permute.xlu1 %381 }
 0x4a3   :  { %v384_v52 = vadd.f32 %v382_v51, %v374_v50  ;;  %v171_v50 = vadd.f32 %v1897_v14, %v1962_v2 }
 0x4a5   :  { %1737 = vtanh.f32 %v384_v52 }
 0x4af   :  { %v1738_v59 = vpop.eup %1737 }
 0x4b0   :  { %387 = vrot.lane.b32.xlu0 %v1738_v59, %s1774_s3 }
 0x522   :  { %v388_v60 = vpop.permute.xlu0 %387 }
 0x523   :  { %v1956_v61 = vmul.f32 %v388_v60, %v373_v47 }
 0x525   :  { %392 = vrot.lane.b32.xlu1 %v1956_v61, %s1775_s14 }
 0x597   :  { %v393_v6 = vpop.permute.xlu1 %392 }
 0x598   :  { %1538 = vmatmul.mubr.msk.f32.vlgmr.msra.gmra.mrb[8].mxu0 %vm194_vm5, %v393_v6 }
 0x599   :  { %1665 = vmatpush3.bf16.msra.mxu0 %v1863_v8  ;;  %1559 = vmatprep.mubr.msk.f32.mxu0 %vm1772_vm1, %v1773_v4 }
 0x59a   :  { %1666 = vmatprep.subr.bf16.mxu0 %v1771_v0 }
 0x59d   :  { %1668 = vmatpush3.bf16.msra.mxu0 %v1876_v12 }
 0x59e   :  { %1675 = vmatprep.subr.bf16.mxu0 %v1771_v0 }
 0x66b   :  { %v462_v9 = vpop.f32.mrb[8].mxu0 }
 0x66c   :  { %v466_v10 = vadd.f32 %v462_v9, %v161_v7  ;;  %v1539_v11 = vpop.f32.mrb[9].mxu0 }
 0x66e   :  { %v467_v13 = vmul.f32 0.5, %v466_v10 }
 0x670   :  { %v468_v15 = vsel %vm1900_vm4, %v466_v10, %v467_v13  ;;  %v176_v13 = vadd.f32 %v1960_v1, %v1897_v14 }
 0x671   :  { %1739 = vtanh.f32 %v468_v15 }
 0x67b   :  { %v1740_v16 = vpop.eup %1739 }
 0x67c   :  { %v470_v17 = vadd.f32 1.0, %v1740_v16 }
 0x67e   :  { %v471_v18 = vmul.f32 0.5, %v470_v17 }
 0x680   :  { %v472_v19 = vsel %vm1900_vm4, %v1740_v16, %v471_v18 }
 0x681   :  { %475 = vrot.lane.b32.xlu0 %v472_v19, %s1774_s3  ;;  %v473_v23 = vmul.f32 %v472_v19, %v384_v52 }
 0x6f3   :  { %v476_v20 = vpop.permute.xlu0 %475 }
 0x6f4   :  { %v478_v21 = vmul.f32 %v476_v20, %v472_v19 }
 0x6f6   :  { %480 = vrot.lane.b32.xlu1 %v478_v21, %s1775_s14 }
 0x768   :  { %v481_v24 = vpop.permute.xlu1 %480 }
 0x769   :  { %v483_v25 = vadd.f32 %v481_v24, %v473_v23 }
 0x76b   :  { %1741 = vtanh.f32 %v483_v25 }
 0x775   :  { %v1742_v26 = vpop.eup %1741 }
 0x776   :  { %486 = vrot.lane.b32.xlu0 %v1742_v26, %s1774_s3 }
 0x7e8   :  { %v487_v27 = vpop.permute.xlu0 %486 }
 0x7e9   :  { %v1983_v28 = vmul.f32 %v487_v27, %v472_v19 }
 0x7eb   :  { %491 = vrot.lane.b32.xlu1 %v1983_v28, %s1775_s14 }
 0x85d   :  { %v492_v29 = vpop.permute.xlu1 %491 }
 0x85e   :  { %1549 = vmatmul.mubr.msk.f32.vlgmr.msra.gmra.mrb[4].mxu1 %vm194_vm5, %v492_v29 }
 0x85f   :  { %1671 = vmatpush3.bf16.msra.mxu1 %v1863_v8  ;;  %1570 = vmatprep.mubr.msk.f32.mxu1 %vm1772_vm1, %v1773_v4 }
 0x860   :  { %1672 = vmatprep.subr.bf16.mxu1 %v1771_v0 }
 0x863   :  { %1674 = vmatpush3.bf16.msra.mxu1 %v1876_v12 }
 0x864   :  { %1681 = vmatprep.subr.bf16.mxu1 %v1771_v0 }
 0x931   :  { %v561_v31 = vpop.f32.mrb[4].mxu1 }
 0x932   :  { %v565_v32 = vadd.f32 %v561_v31, %v166_v30  ;;  %v1550_v33 = vpop.f32.mrb[5].mxu1 }
 0x934   :  { %v566_v34 = vmul.f32 0.5, %v565_v32 }
 0x936   :  { %v567_v35 = vsel %vm1900_vm4, %v565_v32, %v566_v34  ;;  %v181_v32 = vadd.f32 %v1897_v14, %v1966_v5 }
 0x937   :  { %1743 = vtanh.f32 %v567_v35 }
 0x941   :  { %v1744_v37 = vpop.eup %1743 }
 0x942   :  { %v569_v38 = vadd.f32 1.0, %v1744_v37 }
 0x944   :  { %v570_v39 = vmul.f32 0.5, %v569_v38 }
 0x946   :  { %v571_v40 = vsel %vm1900_vm4, %v1744_v37, %v570_v39 }
 0x947   :  { %574 = vrot.lane.b32.xlu0 %v571_v40, %s1774_s3  ;;  %v572_v43 = vmul.f32 %v571_v40, %v483_v25 }
 0x9b9   :  { %v575_v41 = vpop.permute.xlu0 %574 }
 0x9ba   :  { %v577_v42 = vmul.f32 %v575_v41, %v571_v40 }
 0x9bc   :  { %579 = vrot.lane.b32.xlu1 %v577_v42, %s1775_s14 }
 0xa2e   :  { %v580_v44 = vpop.permute.xlu1 %579 }
 0xa2f   :  { %v582_v45 = vadd.f32 %v580_v44, %v572_v43 }
 0xa31   :  { %1745 = vtanh.f32 %v582_v45 }
 0xa3b   :  { %v1746_v46 = vpop.eup %1745 }
 0xa3c   :  { %585 = vrot.lane.b32.xlu0 %v1746_v46, %s1774_s3 }
 0xaae   :  { %v586_v47 = vpop.permute.xlu0 %585 }
 0xaaf   :  { %v2002_v48 = vmul.f32 %v586_v47, %v571_v40 }
 0xab1   :  { %590 = vrot.lane.b32.xlu1 %v2002_v48, %s1775_s14 }
 0xb23   :  { %v591_v49 = vpop.permute.xlu1 %590 }
 0xb24   :  { %1560 = vmatmul.mubr.msk.f32.vlgmr.msra.gmra.mrb[10].mxu0 %vm194_vm5, %v591_v49 }
 0xb25   :  { %1677 = vmatpush3.bf16.msra.mxu0 %v1863_v8  ;;  %1581 = vmatprep.mubr.msk.f32.mxu0 %vm1772_vm1, %v1773_v4 }
 0xb26   :  { %1678 = vmatprep.subr.bf16.mxu0 %v1771_v0 }
 0xb29   :  { %1680 = vmatpush3.bf16.msra.mxu0 %v1876_v12 }
 0xb2a   :  { %1687 = vmatprep.subr.bf16.mxu0 %v1771_v0 }
 0xbf7   :  { %v660_v51 = vpop.f32.mrb[10].mxu0 }
 0xbf8   :  { %v664_v52 = vadd.f32 %v660_v51, %v171_v50  ;;  %v1561_v53 = vpop.f32.mrb[11].mxu0 }
 0xbfa   :  { %v665_v54 = vmul.f32 0.5, %v664_v52 }
 0xbfc   :  { %v666_v55 = vsel %vm1900_vm4, %v664_v52, %v665_v54  ;;  %v186_v52 = vadd.f32 %v1964_v3, %v1897_v14  ;;  %v989_v14 = vld [vmem:[%s2161_s5] sm:$0xff]  ;;  %v990_v3 = vld [vmem:[%s2161_s5 + $0x8] sm:$0xff] }
 0xbfd   :  { %1747 = vtanh.f32 %v666_v55  ;;  %v1688_v22 = vpack.c.bf16 %v990_v3, %v989_v14 }
 0xc07   :  { %v1748_v56 = vpop.eup %1747 }
 0xc08   :  { %v668_v57 = vadd.f32 1.0, %v1748_v56 }
 0xc0a   :  { %v669_v58 = vmul.f32 0.5, %v668_v57 }
 0xc0c   :  { %v670_v59 = vsel %vm1900_vm4, %v1748_v56, %v669_v58 }
 0xc0d   :  { %673 = vrot.lane.b32.xlu0 %v670_v59, %s1774_s3  ;;  %v671_v63 = vmul.f32 %v670_v59, %v582_v45 }
 0xc7f   :  { %v674_v60 = vpop.permute.xlu0 %673 }
 0xc80   :  { %v676_v62 = vmul.f32 %v674_v60, %v670_v59 }
 0xc82   :  { %678 = vrot.lane.b32.xlu1 %v676_v62, %s1775_s14 }
 0xcf4   :  { %v679_v2 = vpop.permute.xlu1 %678 }
 0xcf5   :  { %v681_v6 = vadd.f32 %v679_v2, %v671_v63 }
 0xcf7   :  { %1749 = vtanh.f32 %v681_v6 }
 0xd01   :  { %v1750_v7 = vpop.eup %1749 }
 0xd02   :  { %684 = vrot.lane.b32.xlu0 %v1750_v7, %s1774_s3  ;;  %v992_v7 = vld [vmem:[%s2161_s5 + $0x18] sm:$0xff] }
 0xd74   :  { %v685_v9 = vpop.permute.xlu0 %684 }
 0xd75   :  { %v2022_v10 = vmul.f32 %v685_v9, %v670_v59 }
 0xd77   :  { %689 = vrot.lane.b32.xlu1 %v2022_v10, %s1775_s14 }
 0xde9   :  { %v690_v11 = vpop.permute.xlu1 %689 }
 0xdea   :  { %1571 = vmatmul.mubr.msk.f32.vlgmr.msra.gmra.mrb[6].mxu1 %vm194_vm5, %v690_v11 }
 0xdeb   :  { %1683 = vmatpush3.bf16.msra.mxu1 %v1863_v8  ;;  %1592 = vmatprep.mubr.msk.f32.mxu1 %vm1772_vm1, %v1773_v4 }
 0xdec   :  { %1684 = vmatprep.subr.bf16.mxu1 %v1771_v0 }
 0xdef   :  { %1686 = vmatpush3.bf16.msra.mxu1 %v1876_v12 }
 0xdf0   :  { %1693 = vmatprep.subr.bf16.mxu1 %v1771_v0 }
 0xebd   :  { %v759_v15 = vpop.f32.mrb[6].mxu1 }
 0xebe   :  { %v763_v16 = vadd.f32 %v759_v15, %v176_v13  ;;  %v1572_v17 = vpop.f32.mrb[7].mxu1 }
 0xebf   :  { %v986_v17 = vld [vmem:[%s2162_s4 + $0x8] sm:$0xff] }
 0xec0   :  { %v764_v18 = vmul.f32 0.5, %v763_v16 }
 0xec2   :  { %v765_v19 = vsel %vm1900_vm4, %v763_v16, %v764_v18  ;;  %v985_v16 = vld [vmem:[%s2162_s4] sm:$0xff]  ;;  %v987_v18 = vld [vmem:[%s2162_s4 + $0x10] sm:$0xff] }
 0xec3   :  { %1751 = vtanh.f32 %v765_v19  ;;  %v1694_v19 = vpack.c.bf16 %v986_v17, %v985_v16 }
 0xecd   :  { %v1752_v8 = vpop.eup %1751 }
 0xece   :  { %v767_v20 = vadd.f32 1.0, %v1752_v8 }
 0xed0   :  { %v768_v21 = vmul.f32 0.5, %v767_v20 }
 0xed2   :  { %v769_v23 = vsel %vm1900_vm4, %v1752_v8, %v768_v21  ;;  %v988_v8 = vld [vmem:[%s2162_s4 + $0x18] sm:$0xff] }
 0xed3   :  { %772 = vrot.lane.b32.xlu0 %v769_v23, %s1774_s3  ;;  %v770_v1 = vmul.f32 %v769_v23, %v681_v6  ;;  %v991_v6 = vld [vmem:[%s2161_s5 + $0x10] sm:$0xff]  ;;  %v1697_v20 = vpack.c.bf16 %v988_v8, %v987_v18 }
 0xed4   :  { %v1691_v9 = vpack.c.bf16 %v992_v7, %v991_v6 }
 0xf45   :  { %v773_v12 = vpop.permute.xlu0 %772 }
 0xf46   :  { %v775_v24 = vmul.f32 %v773_v12, %v769_v23 }
 0xf48   :  { %777 = vrot.lane.b32.xlu1 %v775_v24, %s1775_s14 }
 0xfba   :  { %v778_v25 = vpop.permute.xlu1 %777 }
 0xfbb   :  { %v780_v26 = vadd.f32 %v778_v25, %v770_v1 }
 0xfbd   :  { %1753 = vtanh.f32 %v780_v26 }
 0xfc7   :  { %v1754_v27 = vpop.eup %1753 }
 0xfc8   :  { %783 = vrot.lane.b32.xlu0 %v1754_v27, %s1774_s3 }
0x103a   :  { %v784_v29 = vpop.permute.xlu0 %783 }
0x103b   :  { %v2042_v30 = vmul.f32 %v784_v29, %v769_v23  ;;  %v1418_v29 = vld [vmem:[%s2163_s6] ss:$0 sm:$0xff] }
0x103d   :  { %788 = vrot.lane.b32.xlu1 %v2042_v30, %s1775_s14 }
0x10af   :  { %v789_v31 = vpop.permute.xlu1 %788 }
0x10b0   :  { %1582 = vmatmul.mubr.msk.f32.vlgmr.msra.gmra.mrb[12].mxu0 %vm194_vm5, %v789_v31 }
0x10b1   :  { %1603 = vmatprep.mubr.msk.f32.mxu0 %vm1772_vm1, %v1773_v4  ;;  %1689 = vmatpush3.bf16.msra.mxu0 %v1688_v22 }
0x10b2   :  { %1690 = vmatprep.subr.bf16.mxu0 %v1771_v0 }
0x10b5   :  { %1692 = vmatpush3.bf16.msra.mxu0 %v1691_v9 }
0x10b6   :  { %1699 = vmatprep.subr.bf16.mxu0 %v1771_v0 }
0x1183   :  { %v858_v33 = vpop.f32.mrb[12].mxu0 }
0x1184   :  { %v862_v34 = vadd.f32 %v858_v33, %v181_v32  ;;  %v1583_v35 = vpop.f32.mrb[13].mxu0 }
0x1186   :  { %v863_v37 = vmul.f32 0.5, %v862_v34 }
0x1188   :  { %v864_v38 = vsel %vm1900_vm4, %v862_v34, %v863_v37 }
0x1189   :  { %1755 = vtanh.f32 %v864_v38 }
0x1193   :  { %v1756_v39 = vpop.eup %1755 }
0x1194   :  { %v866_v40 = vadd.f32 1.0, %v1756_v39 }
0x1196   :  { %v867_v41 = vmul.f32 0.5, %v866_v40 }
0x1198   :  { %v868_v42 = vsel %vm1900_vm4, %v1756_v39, %v867_v41  ;;  %v1778_v41 = vmov 0  }
0x1199   :  { %871 = vrot.lane.b32.xlu0 %v868_v42, %s1774_s3  ;;  %v869_v5 = vmul.f32 %v868_v42, %v780_v26 }
0x119a   :  { %1722 = vset.pattern.permute.xlu0 %v1778_v41 }
0x120b   :  { %v872_v43 = vpop.permute.xlu0 %871 }
0x120c   :  { %v874_v44 = vmul.f32 %v872_v43, %v868_v42 }
0x120e   :  { %876 = vrot.lane.b32.xlu1 %v874_v44, %s1775_s14 }
0x1280   :  { %v877_v45 = vpop.permute.xlu1 %876 }
0x1281   :  { %v879_v46 = vadd.f32 %v877_v45, %v869_v5  ;;  %v1779_v5 = vmov 2   ;;  %v1780_v45 = vmov 7  }
0x1283   :  { %1757 = vtanh.f32 %v879_v46 }
0x128d   :  { %v1758_v47 = vpop.eup %1757 }
0x128e   :  { %882 = vrot.lane.b32.xlu0 %v1758_v47, %s1774_s3  ;;  %v1782_v47 = vmov 4  }
0x1300   :  { %v883_v49 = vpop.permute.xlu0 %882 }
0x1301   :  { %v2058_v50 = vmul.f32 %v883_v49, %v868_v42  ;;  %v1783_v49 = vmov 5  }
0x1303   :  { %887 = vrot.lane.b32.xlu1 %v2058_v50, %s1775_s14 }
0x1375   :  { %v888_v51 = vpop.permute.xlu1 %887 }
0x1376   :  { %1593 = vmatmul.mubr.msk.f32.vlgmr.msra.gmra.mrb[8].mxu1 %vm194_vm5, %v888_v51  ;;  %v1784_v51 = vmov 6  }
0x1377   :  { %1614 = vmatprep.mubr.msk.f32.mxu1 %vm1772_vm1, %v1773_v4  ;;  %1695 = vmatpush3.bf16.msra.mxu1 %v1694_v19 }
0x1378   :  { %1696 = vmatprep.subr.bf16.mxu1 %v1771_v0 }
0x137b   :  { %1698 = vmatpush3.bf16.msra.mxu1 %v1697_v20  ;;  %v1419_v20 = vld [vmem:[%s2166_s8] ss:$0 sm:$0xff] }
0x137c   :  { %1705 = vmatprep.subr.bf16.mxu1 %v1771_v0 }
0x1449   :  { %v957_v53 = vpop.f32.mrb[8].mxu1 }
0x144a   :  { %v961_v54 = vadd.f32 %v957_v53, %v186_v52  ;;  %v1594_v55 = vpop.f32.mrb[9].mxu1  ;;  %v1212_v52 = vld [vmem:[%s2164_s7] sm:$0xff]  ;;  %v1213_v53 = vld [vmem:[%s2164_s7 + $0x8] sm:$0xff] }
0x144b   :  { %v1700_v55 = vpack.c.bf16 %v1213_v53, %v1212_v52 }
0x144c   :  { %v962_v56 = vmul.f32 0.5, %v961_v54 }
0x144e   :  { %v963_v57 = vsel %vm1900_vm4, %v961_v54, %v962_v56  ;;  %v1214_v54 = vld [vmem:[%s2164_s7 + $0x10] sm:$0xff]  ;;  %v1215_v56 = vld [vmem:[%s2164_s7 + $0x18] sm:$0xff] }
0x144f   :  { %1759 = vtanh.f32 %v963_v57  ;;  %v1703_v57 = vpack.c.bf16 %v1215_v56, %v1214_v54 }
0x1459   :  { %v1760_v58 = vpop.eup %1759 }
0x145a   :  { %v965_v59 = vadd.f32 1.0, %v1760_v58 }
0x145c   :  { %v966_v60 = vmul.f32 0.5, %v965_v59 }
0x145e   :  { %v967_v62 = vsel %vm1900_vm4, %v1760_v58, %v966_v60 }
0x145f   :  { %970 = vrot.lane.b32.xlu0 %v967_v62, %s1774_s3  ;;  %v968_v11 = vmul.f32 %v967_v62, %v879_v46  ;;  %v1781_v46 = vmov 3  }
0x14d1   :  { %v971_v63 = vpop.permute.xlu0 %970 }
0x14d2   :  { %v973_v2 = vmul.f32 %v971_v63, %v967_v62 }
0x14d4   :  { %975 = vrot.lane.b32.xlu1 %v973_v2, %s1775_s14 }
0x1546   :  { %v976_v13 = vpop.permute.xlu1 %975 }
0x1547   :  { %v978_v15 = vadd.f32 %v976_v13, %v968_v11 }
0x1549   :  { %1761 = vtanh.f32 %v978_v15  ;;  %994 = vrot.lane.b32.xlu1 %v978_v15, %s1776_s13 }
0x1553   :  { %v1762_v21 = vpop.eup %1761 }
0x1554   :  { %981 = vrot.lane.b32.xlu0 %v1762_v21, %s1774_s3 }
0x15bb   :  { %v995_v23 = vpop.permute.xlu1 %994 }
0x15bc   :  { %1604 = vmatmul.mubr.msk.f32.vlgmr.msra.gmra.mrb[14].mxu0 %vm194_vm5, %v995_v23 }
0x15bd   :  { %1625 = vmatprep.mubr.msk.f32.mxu0 %vm1772_vm1, %v1773_v4  ;;  %1701 = vmatpush3.bf16.msra.mxu0 %v1700_v55 }
0x15be   :  { %1702 = vmatprep.subr.bf16.mxu0 %v1771_v0 }
0x15c1   :  { %1704 = vmatpush3.bf16.msra.mxu0 %v1703_v57 }
0x15c6   :  { %v982_v12 = vpop.permute.xlu0 %981 }
0x15c7   :  { %v2105_v24 = vmul.f32 %v982_v12, %v967_v62 }
0x15c9   :  { %1069 = vrot.lane.b32.xlu0 %v2105_v24, %s1775_s14 }
0x163b   :  { %v1070_v1 = vpop.permute.xlu0 %1069 }
0x163c   :  { %1615 = vmatmul.mubr.msk.f32.vlgmr.msra.gmra.mrb[10].mxu1 %vm194_vm5, %v1070_v1  ;;  %v1421_v1 = vld [vmem:[%s2167_s10] ss:$0 sm:$0xff] }
0x163d   :  { %1632 = vmatprep.mubr.msk.f32.mxu1 %vm1772_vm1, %v1773_v4  ;;  %v1777_v4 = vmov 1  }
0x163e   :  { %1723 = vset.pattern.permute.xlu1 %v1777_v4 }
0x168f   :  { %v1064_v25 = vpop.f32.mrb[14].mxu0 }
0x1690   :  { %v1605_v26 = vpop.f32.mrb[15].mxu0 }
0x170f   :  { %v1139_v27 = vpop.f32.mrb[10].mxu1 }
0x1710   :  { %v1140_v31 = vadd.f32 %v1139_v27, %v1064_v25  ;;  %v1616_v32 = vpop.f32.mrb[11].mxu1 }
0x1712   :  { %v1150_v33 = vadd.f32 %v1418_v29, %v1140_v31 }
0x1714   :  { %v1152_v34 = vsel %vm1151_vm6, %v1150_v33, -inf }
0x1715   :  { %1153 = vmax.xlane.f32.xlu1 %v1152_v34 }
0x17a2   :  { %v1154_v35 = vpop.xlane.xlu1 %1153 }
0x17a3   :  { %v1155_v37 = vsub.f32 %v1150_v33, %v1154_v35 }
0x17a5   :  { %v1156_v38 = vmul.f32 1.442695, %v1155_v37 }
0x17a7   :  { %1763 = vpow2.f32 %v1156_v38 }
0x17b1   :  { %v1764_v39 = vpop.eup %1763 }
0x17b2   :  { %v1158_v40 = vsel %vm1151_vm6, %v1764_v39, 0.0 }
0x17b3   :  { %1159 = vadd.xlane.f32.xlu0 %v1158_v40 }
0x1840   :  { %v1160_v42 = vpop.xlane.xlu0 %1159 }
0x1841   :  { %1765 = vrcp.f32 %v1160_v42 }
0x184b   :  { %v1766_v43 = vpop.eup %1765 }
0x184c   :  { %v1162_v44 = vmul.f32 %v1766_v43, %v1764_v39 }
0x184e   :  { %1170 = vperm.xlu1 %1723, %v1162_v44   ;;  %1165 = vperm.xlu0 %1722, %v1162_v44  }
0x1852   :  { %1724 = vset.pattern.permute.xlu1 %v1779_v5  ;;  %1730 = vset.pattern.permute.xlu0 %v1780_v45 }
0x1853   :  { %1176 = vperm.xlu1 %1724, %v1162_v44  }
0x1857   :  { %1725 = vset.pattern.permute.xlu1 %v1781_v46 }
0x1858   :  { %1182 = vperm.xlu1 %1725, %v1162_v44  }
0x185c   :  { %1726 = vset.pattern.permute.xlu1 %v1782_v47 }
0x185d   :  { %1188 = vperm.xlu1 %1726, %v1162_v44  }
0x1861   :  { %1727 = vset.pattern.permute.xlu1 %v1783_v49 }
0x1862   :  { %1194 = vperm.xlu1 %1727, %v1162_v44  }
0x1866   :  { %1728 = vset.pattern.permute.xlu1 %v1784_v51 }
0x1867   :  { %1200 = vperm.xlu1 %1728, %v1162_v44  }
0x186b   :  { %1729 = vset.pattern.permute.xlu1 %v1780_v45 }
0x186c   :  { %1206 = vperm.xlu1 %1729, %v1162_v44  }
0x18cd   :  { %v1171_v58 = vpop.permute.xlu1 %1170  ;;  %v1166_v62 = vpop.permute.xlu0 %1165 }
0x18ce   :  { %v1173_v2 = vmul.f32 %v1171_v58, %v1956_v61  ;;  %v1168_v14 = vmul.f32 %v1166_v62, %v1911_v36 }
0x18d0   :  { %v1174_v22 = vadd.f32 %v1173_v2, %v1168_v14 }
0x18d2   :  { %v1177_v59 = vpop.permute.xlu1 %1176 }
0x18d3   :  { %v1179_v3 = vmul.f32 %v1177_v59, %v1983_v28 }
0x18d5   :  { %v1180_v9 = vadd.f32 %v1179_v3, %v1174_v22 }
0x18d7   :  { %v1183_v60 = vpop.permute.xlu1 %1182 }
0x18d8   :  { %v1185_v7 = vmul.f32 %v1183_v60, %v2002_v48 }
0x18da   :  { %v1186_v0 = vadd.f32 %v1185_v7, %v1180_v9 }
0x18dc   :  { %v1189_v63 = vpop.permute.xlu1 %1188 }
0x18dd   :  { %v1191_v11 = vmul.f32 %v1189_v63, %v2022_v10  ;;  %v1299_v10 = vld [vmem:[%s2165_s9] sm:$0xff] }
0x18df   :  { %v1192_v16 = vadd.f32 %v1191_v11, %v1186_v0 }
0x18e1   :  { %v1195_v6 = vpop.permute.xlu1 %1194 }
0x18e2   :  { %v1197_v13 = vmul.f32 %v1195_v6, %v2042_v30  ;;  %v1300_v30 = vld [vmem:[%s2165_s9 + $0x8] sm:$0xff] }
0x18e4   :  { %v1198_v18 = vadd.f32 %v1197_v13, %v1192_v16 }
0x18e6   :  { %v1201_v15 = vpop.permute.xlu1 %1200 }
0x18e7   :  { %v1203_v17 = vmul.f32 %v1201_v15, %v2058_v50  ;;  %v1706_v50 = vpack.c.bf16 %v1300_v30, %v1299_v10 }
0x18e9   :  { %v1204_v19 = vadd.f32 %v1203_v17, %v1198_v18  ;;  %1707 = vmatpush3.bf16.msra.mxu1 %v1706_v50 }
0x18eb   :  { %v1207_v61 = vpop.permute.xlu1 %1206 }
0x18ec   :  { %v1209_v36 = vmul.f32 %v1207_v61, %v2105_v24 }
0x18ee   :  { %v1210_v28 = vadd.f32 %v1209_v36, %v1204_v19 }
0x18f0   :  { %v1211_v8 = vmax.f32 %v1210_v28, 0.0 }
0x18f2   :  { %1224 = vrot.lane.b32.xlu1 %v1211_v8, %s1775_s14 }
0x1964   :  { %v1225_v48 = vpop.permute.xlu1 %1224 }
0x1965   :  { %1626 = vmatmul.mubr.msk.f32.vlgmr.msra.gmra.mrb[16].mxu0 %vm194_vm5, %v1225_v48 }
0x1a38   :  { %v1294_v21 = vpop.f32.mrb[16].mxu0 }
0x1a39   :  { %v1295_v23 = vadd.f32 %v1419_v20, %v1294_v21  ;;  %v1627_v12 = vpop.f32.mrb[17].mxu0 }
0x1a3b   :  { %v1298_v24 = vmax.f32 %v1295_v23, 0.0 }
0x1a3d   :  { %1633 = vmatmul.mubr.msk.f32.vlgmr.msra.gmra.mrb[12].mxu1 %vm59_vm0, %v1298_v24 }
0x1b10   :  { %v1377_v25 = vpop.f32.mrb[12].mxu1 }
0x1b11   :  { %v1378_v26 = vadd.f32 %v1421_v1, %v1377_v25  ;;  %v1634_v27 = vpop.f32.mrb[13].mxu1 }
0x1b13   :  { %v1382_v29 = vsel %vm1381_vm7, %v1378_v26, -inf }
0x1b14   :  { %1383 = vmax.xlane.f32.xlu0 %v1382_v29 }
0x1ba1   :  { %v1384_v31 = vpop.xlane.xlu0 %1383 }
0x1ba2   :  { %v1385_v32 = vsub.f32 %v1378_v26, %v1384_v31 }
0x1ba4   :  { %v1386_v33 = vmul.f32 1.442695, %v1385_v32 }
0x1ba6   :  { %1767 = vpow2.f32 %v1386_v33 }
0x1bb0   :  { %v1768_v34 = vpop.eup %1767 }
0x1bb1   :  { %v1388_v35 = vsel %vm1381_vm7, %v1768_v34, 0.0 }
0x1bb2   :  { %1389 = vadd.xlane.f32.xlu1 %v1388_v35 }
0x1c3f   :  { %v1390_v37 = vpop.xlane.xlu1 %1389 }
0x1c40   :  { %1769 = vlog2.f32 %v1390_v37 }
0x1c4a   :  { %v1770_v38 = vpop.eup %1769 }
0x1c4b   :  { %v1392_v39 = vmul.f32 0.6931472, %v1770_v38 }
0x1c4d   :  { %v1393_v40 = vadd.f32 %v1392_v39, %v1384_v31 }
0x1c4f   :  { %v1394_v4 = vsub.f32 %v1378_v26, %v1393_v40 }
0x1c51   :  { %1395 = vst.msk [vmem:[%s2168_s11] sm:$0xff] %vm1381_vm7, %v1394_v4 }

</bundles_post_ra>
